<compile_context>
chip_gen: v5e
topology: v5e:2x2
jax: 0.10.0
libtpu: 0.0.40
codegen_flags: <defaults>
</compile_context>

<pallas_src>
import functools

import jax
import jax.numpy as jnp
from jax.experimental import pallas as pl
from jax.experimental.pallas import tpu as pltpu

LANE = 128      # f32/bf16 lane width
SUBLANE = 8     # f32 sublane width


def _round_up(x, m):
    return ((x + m - 1) // m) * m


def _vmem():
    return pl.BlockSpec(memory_space=pltpu.MemorySpace.VMEM)


# ----------------------------- fused kernel ---------------------------------

def _ddpg_fused_kernel(x_ref, w_ref, b_ref, act_ref, q_ref, *, S_p, H_p, A_p):
    f32 = jnp.float32
    bf16 = jnp.bfloat16

    # Static row offsets inside the packed bf16 weight slab (all multiples of
    # 128 -> aligned with (16,128) bf16 tiles; lane splits at 0/H_p/2*H_p).
    r_w1 = 0                    # [aw1  | cw1s]   rows S_p, cols 2*H_p
    r_w2 = S_p                  # [aw2  | cw2 ]   rows H_p, cols 2*H_p
    r_w3 = S_p + H_p            # [aw3  | 0   ]   rows H_p, cols A_p
    r_wa = S_p + 2 * H_p        # [cw1a | 0   ]   rows A_p, cols H_p

    x = x_ref[...]                                        # [B_p, S_p] bf16

    # Fused layer 1: actor L1 + critic state contribution, one N = 2*H_p pass.
    w1cat = w_ref[r_w1:r_w1 + S_p, 0:2 * H_p]
    b1cat = b_ref[0:1, 0:2 * H_p]                         # [ab1 | cb1] (f32)
    h1 = jnp.dot(x, w1cat, preferred_element_type=f32) + b1cat   # [B_p, 2*H_p]

    ha = jnp.maximum(h1[:, 0:H_p], 0.0)                   # actor hidden-1
    cs = h1[:, H_p:2 * H_p]                               # s@W1s + cb1 (pre-ReLU)

    # Actor layer 2 (ReLU).
    aw2 = w_ref[r_w2:r_w2 + H_p, 0:H_p]
    ha2 = jnp.dot(ha.astype(bf16), aw2, preferred_element_type=f32) + b_ref[1:2, 0:H_p]
    ha2 = jnp.maximum(ha2, 0.0)

    # Actor layer 3 (tanh) -> action, lane-dense store.
    aw3 = w_ref[r_w3:r_w3 + H_p, 0:A_p]
    action = jnp.tanh(jnp.dot(ha2.astype(bf16), aw3, preferred_element_type=f32)
                      + b_ref[2:3, 0:A_p])                # [B_p, A_p]
    act_ref[...] = action

    # Critic layer 1: add the action contribution, then ReLU.
    # (padded action lanes are tanh(0)=0 and hit zero cw1a rows -> inert)
    cw1a = w_ref[r_wa:r_wa + A_p, 0:H_p]
    hc = jnp.maximum(
        cs + jnp.dot(action.astype(bf16), cw1a, preferred_element_type=f32), 0.0)

    # Critic layer 2 (ReLU).
    cw2 = w_ref[r_w2:r_w2 + H_p, H_p:2 * H_p]
    hc2 = jnp.maximum(
        jnp.dot(hc.astype(bf16), cw2, preferred_element_type=f32) + b_ref[3:4, 0:H_p],
        0.0)

    # Final [H,1] matmul as VPU multiply + XLU lane reduction (no MXU drain
    # for a single output lane).  cb3 is lane-replicated -> unmasked store.
    w3row = b_ref[4:5, 0:H_p]                             # f32 row
    q = jnp.sum(hc2 * w3row, axis=-1, keepdims=True)      # [B_p, 1]
    q_ref[...] = q + b_ref[5:6, 0:LANE]                   # [B_p, 128] lane-dense


# ----------------------------- wrapper ---------------------------------------

@functools.partial(jax.jit, static_argnums=(3, 4, 5))
def ddpg_agent_forward(x_padded, w_slab, b_slab, dims, batch, action_dim):
    """action = actor(state); q = critic([state, action]).  One fused pallas_call."""
    S_p, H_p, A_p = dims
    B_p = x_padded.shape[0]
    kernel = functools.partial(_ddpg_fused_kernel, S_p=S_p, H_p=H_p, A_p=A_p)

    action_pad, q_pad = pl.pallas_call(
        kernel,
        out_shape=(jax.ShapeDtypeStruct((B_p, A_p), jnp.float32),
                   jax.ShapeDtypeStruct((B_p, LANE), jnp.float32)),
        in_specs=[_vmem(), _vmem(), _vmem()],     # 3 inputs -> 3 DMAs
        out_specs=(_vmem(), _vmem()),
    )(x_padded, w_slab, b_slab)

    return action_pad[:batch, :action_dim], q_pad[:batch, :1]


def pad_state(state, S_p):
    """Pad/cast the state ONCE to [B_p, S_p] bf16 (callers keep it padded)."""
    B, S = state.shape
    B_p = _round_up(max(B, 1), SUBLANE)
    x = jnp.zeros((B_p, S_p), jnp.bfloat16)
    return x.at[:B, :S].set(state.astype(jnp.bfloat16))


# ----------------------------- param init / packing --------------------------

def _linear_init(key, fan_in, fan_out):
    # PyTorch nn.Linear default: U(-1/sqrt(fan_in), 1/sqrt(fan_in))
    kw, kb = jax.random.split(key)
    bound = 1.0 / jnp.sqrt(float(fan_in))
    w = jax.random.uniform(kw, (fan_in, fan_out), jnp.float32, -bound, bound)
    b = jax.random.uniform(kb, (1, fan_out), jnp.float32, -bound, bound)
    return w, b


def make_params(key, state_dim, action_dim, hidden):
    k = jax.random.split(key, 6)
    aw1, ab1 = _linear_init(k[0], state_dim, hidden)
    aw2, ab2 = _linear_init(k[1], hidden, hidden)
    aw3, ab3 = _linear_init(k[2], hidden, action_dim)
    actor = dict(w1=aw1, b1=ab1, w2=aw2, b2=ab2, w3=aw3, b3=ab3)

    cw1, cb1 = _linear_init(k[3], state_dim + action_dim, hidden)
    cw2, cb2 = _linear_init(k[4], hidden, hidden)
    cw3, cb3 = _linear_init(k[5], hidden, 1)
    critic = dict(w1s=cw1[:state_dim], w1a=cw1[state_dim:], b1=cb1,
                  w2=cw2, b2=cb2, w3=cw3, b3=cb3)
    return actor, critic


def pack_params(actor, critic):
    """Zero-pad and pack ALL weights/biases into two VMEM slabs (built once).

    Weight slab (bf16), rows = S_p + 2*H_p + A_p, cols = 2*H_p:
        [  aw1  | cw1s ]   rows   0 .. S_p
        [  aw2  | cw2  ]   rows S_p .. S_p+H_p
        [  aw3  |  0   ]   rows S_p+H_p .. S_p+2*H_p
        [ cw1a  |  0   ]   rows S_p+2*H_p .. S_p+2*H_p+A_p
    Bias slab (f32), [8, 2*H_p]:
        row0 [ab1|cb1], row1 ab2, row2 ab3, row3 cb2, row4 cw3 (as a row),
        row5 cb3 replicated across lanes.
    Zero padding is mathematically inert (checked against the f32 reference).
    """
    S, H = actor["w1"].shape
    A = actor["w3"].shape[1]
    S_p = _round_up(S, LANE)
    H_p = _round_up(H, LANE)
    A_p = _round_up(A, LANE)
    W_cols = max(2 * H_p, A_p)
    rows = S_p + 2 * H_p + A_p

    w = jnp.zeros((rows, W_cols), jnp.float32)
    w = w.at[0:S, 0:H].set(actor["w1"])
    w = w.at[0:S, H_p:H_p + H].set(critic["w1s"])
    w = w.at[S_p:S_p + H, 0:H].set(actor["w2"])
    w = w.at[S_p:S_p + H, H_p:H_p + H].set(critic["w2"])
    w = w.at[S_p + H_p:S_p + H_p + H, 0:A].set(actor["w3"])
    w = w.at[S_p + 2 * H_p:S_p + 2 * H_p + A, 0:H].set(critic["w1a"])
    w = w.astype(jnp.bfloat16)

    b = jnp.zeros((SUBLANE, W_cols), jnp.float32)
    b = b.at[0, 0:H].set(actor["b1"][0])
    b = b.at[0, H_p:H_p + H].set(critic["b1"][0])
    b = b.at[1, 0:H].set(actor["b2"][0])
    b = b.at[2, 0:A].set(actor["b3"][0])
    b = b.at[3, 0:H].set(critic["b2"][0])
    b = b.at[4, 0:H].set(critic["w3"][:, 0])          # [H,1] column as a row
    b = b.at[5, :].set(critic["b3"][0, 0])            # scalar bias, lane-replicated

    return w, b, (S_p, H_p, A_p)


# ----------------------------- reference -------------------------------------

def _reference(state, ap, cp):
    h = jnp.maximum(state @ ap["w1"] + ap["b1"], 0.0)
    h = jnp.maximum(h @ ap["w2"] + ap["b2"], 0.0)
    action = jnp.tanh(h @ ap["w3"] + ap["b3"])
    h = jnp.maximum(state @ cp["w1s"] + action @ cp["w1a"] + cp["b1"], 0.0)
    h = jnp.maximum(h @ cp["w2"] + cp["b2"], 0.0)
    q = h @ cp["w3"] + cp["b3"]
    return action, q


# ----------------------------- main -------------------------------------------

if __name__ == "__main__":
    B, S, A, H = 2, 16, 8, 32

    key = jax.random.PRNGKey(0)
    k_state, k_params = jax.random.split(key)
    state = jax.random.normal(k_state, (B, S), jnp.float32)

    actor_params, critic_params = make_params(k_params, S, A, H)
    w_slab, b_slab, dims = pack_params(actor_params, critic_params)

    # State padded/cast once (a rollout/training loop would keep it padded).
    x_padded = pad_state(state, dims[0])

    action, q = ddpg_agent_forward(x_padded, w_slab, b_slab, dims, B, A)
    jax.block_until_ready((action, q))

    ref_action, ref_q = _reference(state, actor_params, critic_params)
    assert action.shape == (B, A) and q.shape == (B, 1)
    # MXU operands are bf16 (f32 accumulate) -> loosened tolerances vs f32 ref.
    assert jnp.allclose(action, ref_action, atol=5e-2, rtol=5e-2)
    assert jnp.allclose(q, ref_q, atol=5e-2, rtol=5e-2)

    # TODO(synk): replay-buffer sampling, Adam updates, grad clipping,
    # soft/hard target updates, OU exploration noise and weight_items'
    # bernoulli sampling are host-side training-loop logic, not forward-pass
    # kernel work.
    print("KERNEL_OK")
</pallas_src>

<mosaic_0001>
module attributes {stable_mosaic.version = 11 : i64} {
  func.func @_ddpg_fused_kernel(%arg0: memref<8x128xbf16, #tpu.memory_space<vmem>>, %arg1: memref<512x256xbf16, #tpu.memory_space<vmem>>, %arg2: memref<8x256xf32, #tpu.memory_space<vmem>>, %arg3: memref<8x128xf32, #tpu.memory_space<vmem>>, %arg4: memref<8x128xf32, #tpu.memory_space<vmem>>) attributes {dimension_semantics = [], scalar_prefetch = 0 : i64, scratch_operands = 0 : i64, tpu.core_type = #tpu.core_type<tc>} {
    %c0 = arith.constant 0 : index
    %c0_0 = arith.constant 0 : index
    %0 = vector.load %arg0[%c0, %c0_0] : memref<8x128xbf16, #tpu.memory_space<vmem>>, vector<8x128xbf16>
    %c0_1 = arith.constant 0 : index
    %c0_2 = arith.constant 0 : index
    %1 = vector.load %arg1[%c0_1, %c0_2] : memref<512x256xbf16, #tpu.memory_space<vmem>>, vector<128x256xbf16>
    %c0_3 = arith.constant 0 : index
    %c0_4 = arith.constant 0 : index
    %2 = vector.load %arg2[%c0_3, %c0_4] : memref<8x256xf32, #tpu.memory_space<vmem>>, vector<1x256xf32>
    %cst = arith.constant dense<0.000000e+00> : vector<8x256xf32>
    %3 = tpu.matmul %0, %1, %cst {dimension_numbers = #tpu.dot_dimension_numbers<[1], [0], [0], [1], [0, 0, 1, 1], [], []>} : vector<8x128xbf16>, vector<128x256xbf16>, vector<8x256xf32> -> vector<8x256xf32>
    %4 = vector.broadcast %2 : vector<1x256xf32> to vector<8x256xf32>
    %5 = arith.addf %3, %4 : vector<8x256xf32>
    %6 = vector.extract_strided_slice %5 {offsets = [0, 0], sizes = [8, 128], strides = [1, 1]} : vector<8x256xf32> to vector<8x128xf32>
    %cst_5 = arith.constant 0.000000e+00 : f32
    %7 = vector.broadcast %cst_5 : f32 to vector<8x128xf32>
    %8 = arith.maximumf %6, %7 : vector<8x128xf32>
    %9 = vector.extract_strided_slice %5 {offsets = [0, 128], sizes = [8, 128], strides = [1, 1]} : vector<8x256xf32> to vector<8x128xf32>
    %c128 = arith.constant 128 : index
    %c0_6 = arith.constant 0 : index
    %10 = vector.load %arg1[%c128, %c0_6] : memref<512x256xbf16, #tpu.memory_space<vmem>>, vector<128x128xbf16>
    %11 = arith.truncf %8 : vector<8x128xf32> to vector<8x128xbf16>
    %cst_7 = arith.constant dense<0.000000e+00> : vector<8x128xf32>
    %12 = tpu.matmul %11, %10, %cst_7 {dimension_numbers = #tpu.dot_dimension_numbers<[1], [0], [0], [1], [0, 0, 1, 1], [], []>} : vector<8x128xbf16>, vector<128x128xbf16>, vector<8x128xf32> -> vector<8x128xf32>
    %c1 = arith.constant 1 : index
    %c0_8 = arith.constant 0 : index
    %13 = vector.load %arg2[%c1, %c0_8] : memref<8x256xf32, #tpu.memory_space<vmem>>, vector<1x128xf32>
    %14 = vector.broadcast %13 : vector<1x128xf32> to vector<8x128xf32>
    %15 = arith.addf %12, %14 : vector<8x128xf32>
    %cst_9 = arith.constant 0.000000e+00 : f32
    %16 = vector.broadcast %cst_9 : f32 to vector<8x128xf32>
    %17 = arith.maximumf %15, %16 : vector<8x128xf32>
    %c256 = arith.constant 256 : index
    %c0_10 = arith.constant 0 : index
    %18 = vector.load %arg1[%c256, %c0_10] : memref<512x256xbf16, #tpu.memory_space<vmem>>, vector<128x128xbf16>
    %19 = arith.truncf %17 : vector<8x128xf32> to vector<8x128xbf16>
    %cst_11 = arith.constant dense<0.000000e+00> : vector<8x128xf32>
    %20 = tpu.matmul %19, %18, %cst_11 {dimension_numbers = #tpu.dot_dimension_numbers<[1], [0], [0], [1], [0, 0, 1, 1], [], []>} : vector<8x128xbf16>, vector<128x128xbf16>, vector<8x128xf32> -> vector<8x128xf32>
    %c2 = arith.constant 2 : index
    %c0_12 = arith.constant 0 : index
    %21 = vector.load %arg2[%c2, %c0_12] : memref<8x256xf32, #tpu.memory_space<vmem>>, vector<1x128xf32>
    %22 = vector.broadcast %21 : vector<1x128xf32> to vector<8x128xf32>
    %23 = arith.addf %20, %22 : vector<8x128xf32>
    %24 = math.tanh %23 : vector<8x128xf32>
    %c0_13 = arith.constant 0 : index
    %c0_14 = arith.constant 0 : index
    %25 = vector.load %arg3[%c0_13, %c0_14] : memref<8x128xf32, #tpu.memory_space<vmem>>, vector<8x128xf32>
    tpu.vector_store %arg3[%c0_13, %c0_14], %24 {strides = array<i32>} : memref<8x128xf32, #tpu.memory_space<vmem>>, vector<8x128xf32>,
    %c384 = arith.constant 384 : index
    %c0_15 = arith.constant 0 : index
    %26 = vector.load %arg1[%c384, %c0_15] : memref<512x256xbf16, #tpu.memory_space<vmem>>, vector<128x128xbf16>
    %27 = arith.truncf %24 : vector<8x128xf32> to vector<8x128xbf16>
    %cst_16 = arith.constant dense<0.000000e+00> : vector<8x128xf32>
    %28 = tpu.matmul %27, %26, %cst_16 {dimension_numbers = #tpu.dot_dimension_numbers<[1], [0], [0], [1], [0, 0, 1, 1], [], []>} : vector<8x128xbf16>, vector<128x128xbf16>, vector<8x128xf32> -> vector<8x128xf32>
    %29 = arith.addf %9, %28 : vector<8x128xf32>
    %cst_17 = arith.constant 0.000000e+00 : f32
    %30 = vector.broadcast %cst_17 : f32 to vector<8x128xf32>
    %31 = arith.maximumf %29, %30 : vector<8x128xf32>
    %c128_18 = arith.constant 128 : index
    %c128_19 = arith.constant 128 : index
    %32 = vector.load %arg1[%c128_18, %c128_19] : memref<512x256xbf16, #tpu.memory_space<vmem>>, vector<128x128xbf16>
    %33 = arith.truncf %31 : vector<8x128xf32> to vector<8x128xbf16>
    %cst_20 = arith.constant dense<0.000000e+00> : vector<8x128xf32>
    %34 = tpu.matmul %33, %32, %cst_20 {dimension_numbers = #tpu.dot_dimension_numbers<[1], [0], [0], [1], [0, 0, 1, 1], [], []>} : vector<8x128xbf16>, vector<128x128xbf16>, vector<8x128xf32> -> vector<8x128xf32>
    %c3 = arith.constant 3 : index
    %c0_21 = arith.constant 0 : index
    %35 = vector.load %arg2[%c3, %c0_21] : memref<8x256xf32, #tpu.memory_space<vmem>>, vector<1x128xf32>
    %36 = vector.broadcast %35 : vector<1x128xf32> to vector<8x128xf32>
    %37 = arith.addf %34, %36 : vector<8x128xf32>
    %cst_22 = arith.constant 0.000000e+00 : f32
    %38 = vector.broadcast %cst_22 : f32 to vector<8x128xf32>
    %39 = arith.maximumf %37, %38 : vector<8x128xf32>
    %c4 = arith.constant 4 : index
    %c0_23 = arith.constant 0 : index
    %40 = vector.load %arg2[%c4, %c0_23] : memref<8x256xf32, #tpu.memory_space<vmem>>, vector<1x128xf32>
    %41 = vector.broadcast %40 : vector<1x128xf32> to vector<8x128xf32>
    %42 = arith.mulf %39, %41 : vector<8x128xf32>
    %cst_24 = arith.constant dense<0.000000e+00> : vector<8xf32>
    %43 = vector.multi_reduction <add>, %42, %cst_24 [1] : vector<8x128xf32> to vector<8xf32>
    %44 = vector.shape_cast %43 : vector<8xf32> to vector<8x1xf32>
    %c5 = arith.constant 5 : index
    %c0_25 = arith.constant 0 : index
    %45 = vector.load %arg2[%c5, %c0_25] : memref<8x256xf32, #tpu.memory_space<vmem>>, vector<1x128xf32>
    %46 = vector.broadcast %44 : vector<8x1xf32> to vector<8x128xf32>
    %47 = vector.broadcast %45 : vector<1x128xf32> to vector<8x128xf32>
    %48 = arith.addf %46, %47 : vector<8x128xf32>
    %c0_26 = arith.constant 0 : index
    %c0_27 = arith.constant 0 : index
    %49 = vector.load %arg4[%c0_26, %c0_27] : memref<8x128xf32, #tpu.memory_space<vmem>>, vector<8x128xf32>
    tpu.vector_store %arg4[%c0_26, %c0_27], %48 {strides = array<i32>} : memref<8x128xf32, #tpu.memory_space<vmem>>, vector<8x128xf32>,
    return
  }
}

</mosaic_0001>

<bundles_post_ra>
// kernel: ddpg_agent_forward.1
= control target key start
LH: loop header
LB: loop body
LE: loop exit
PB: predicated region body
PF: predicated region fallthrough
CT: control target
= control target key end

     0   :  { %10 = vsyncpa [#allocation3], 0  ;;  %s903_s0 = inlined_call_operand.hbm [shape: bf16[8,128], index: 0, kind: input, shape index: {}]   ;;  %s904_s1 = inlined_call_operand.hbm [shape: bf16[512,256], index: 1, kind: input, shape index: {}]   ;;  %s905_s2 = inlined_call_operand.hbm [shape: f32[8,256], index: 2, kind: input, shape index: {}]   ;;  %s906_s3 = inlined_call_operand.vmem [shape: f32[8,128], index: 3, kind: output, shape index: {0}]   ;;  %s907_s4 = inlined_call_operand.vmem [shape: f32[8,128], index: 4, kind: output, shape index: {1}]  }
   0x1   :  { %11 = vsyncpa [#allocation5], 0  ;;  %s27_s17 = sshll.u32 %s904_s1, 4  ;;  %s850_s18 = smov [#allocation4]   ;;  %s28_s17 = int_to_ptr.hbm [resolvable:$true] %s27_s17 }
   0x2   :  { %s29_s19 = sshll.u32 %s850_s18, 4  ;;  %s17_s22 = sshll.u32 %s903_s0, 4  ;;  %s30_s19 = int_to_ptr.vmem [resolvable:$true] %s29_s19  ;;  %s18_s22 = int_to_ptr.hbm [resolvable:$true] %s17_s22 }
   0x3   :  { %s851_s23 = smov 128   ;;  %s852_s24 = smov 8  }
   0x4   :  { %35 = dma.hbm_to_vmem [thread:$0]  %s28_s17, 8192, %s30_s19, [#allocation5], %s851_s23, %s851_s23, %s852_s24  }
   0x5   :  { %s853_s25 = smov [#allocation2]   ;;  %s41_s29 = sshll.u32 %s905_s2, 4  ;;  %s42_s29 = int_to_ptr.hbm [resolvable:$true] %s41_s29 }
   0x6   :  { %s19_s26 = sshll.u32 %s853_s25, 4  ;;  %s854_s1 = smov [#allocation6]   ;;  %s20_s26 = int_to_ptr.vmem [resolvable:$true] %s19_s26 }
   0x7   :  { %22 = dma.hbm_to_vmem [thread:$0]  %s18_s22, 64, %s20_s26, [#allocation3]  }
   0x8   :  { %s43_s30 = sshll.u32 %s854_s1, 4  ;;  %s44_s30 = int_to_ptr.vmem [resolvable:$true] %s43_s30 }
   0x9   :  { %46 = dma.hbm_to_vmem [thread:$0]  %s42_s29, 256, %s44_s30, [#allocation5]  }
   0xa   :  { %846 = dma.done.wait [#allocation3], 64  }
   0xb   :  { %847 = vsyncadd [#allocation3], 4294967232 }
   0xc   :  { %848 = dma.done.wait [#allocation5], 8448  }
   0xd   :  { %849 = vsyncadd [#allocation5], 4294958848  ;;  %v585_v0 = vld [vmem:[#allocation4 + $0x70] sm:$0xf]  ;;  %v734_v1 = vld [vmem:[#allocation4 + $0x74] sm:$0xf0] }
   0xe   :  { %v577_v2 = vld [vmem:[#allocation4 + $0x60] sm:$0xf]  ;;  %v586_v3 = vor.u32 %v734_v1, %v585_v0  ;;  %v732_v4 = vld [vmem:[#allocation4 + $0x64] sm:$0xf0]  ;;  %v569_v6 = vld [vmem:[#allocation4 + $0x50] sm:$0xf] }
   0xf   :  { %v578_v5 = vor.u32 %v732_v4, %v577_v2  ;;  %v730_v7 = vld [vmem:[#allocation4 + $0x54] sm:$0xf0]  ;;  %v621_v8 = vld [vmem:[#allocation4 + $0xf0] sm:$0xf]  ;;  %v617_v10 = vld [vmem:[#allocation4 + $0xe0] sm:$0xf] }
  0x10   :  { %162 = vmatpush.bf16.msra.mxu0 %v586_v3  ;;  %v742_v9 = vld [vmem:[#allocation4 + $0xf4] sm:$0xf0]  ;;  %v741_v11 = vld [vmem:[#allocation4 + $0xe4] sm:$0xf0]  ;;  %v570_v12 = vor.u32 %v730_v7, %v569_v6  ;;  %v561_v14 = vld [vmem:[#allocation4 + $0x40] sm:$0xf] }
  0x11   :  { %v622_v13 = vor.u32 %v742_v9, %v621_v8  ;;  %v728_v15 = vld [vmem:[#allocation4 + $0x44] sm:$0xf0]  ;;  %v618_v16 = vor.u32 %v741_v11, %v617_v10  ;;  %v613_v17 = vld [vmem:[#allocation4 + $0xd0] sm:$0xf]  ;;  %v740_v18 = vld [vmem:[#allocation4 + $0xd4] sm:$0xf0] }
  0x12   :  { %v562_v19 = vor.u32 %v728_v15, %v561_v14  ;;  %v553_v20 = vld [vmem:[#allocation4 + $0x30] sm:$0xf]  ;;  %v726_v21 = vld [vmem:[#allocation4 + $0x34] sm:$0xf0]  ;;  %v614_v22 = vor.u32 %v740_v18, %v613_v17  ;;  %v609_v23 = vld [vmem:[#allocation4 + $0xc0] sm:$0xf] }
  0x13   :  { %255 = vmatpush.bf16.msra.mxu2 %v622_v13  ;;  %v739_v24 = vld [vmem:[#allocation4 + $0xc4] sm:$0xf0]  ;;  %v554_v25 = vor.u32 %v726_v21, %v553_v20  ;;  %v545_v26 = vld [vmem:[#allocation4 + $0x20] sm:$0xf]  ;;  %v605_v29 = vld [vmem:[#allocation4 + $0xb0] sm:$0xf] }
  0x14   :  { %163 = vmatpush.bf16.msra.mxu0 %v578_v5  ;;  %v724_v27 = vld [vmem:[#allocation4 + $0x24] sm:$0xf0]  ;;  %v610_v28 = vor.u32 %v739_v24, %v609_v23  ;;  %v738_v30 = vld [vmem:[#allocation4 + $0xb4] sm:$0xf0]  ;;  %v537_v32 = vld [vmem:[#allocation4 + $0x10] sm:$0xf] }
  0x15   :  { %v546_v31 = vor.u32 %v724_v27, %v545_v26  ;;  %v722_v33 = vld [vmem:[#allocation4 + $0x14] sm:$0xf0]  ;;  %v606_v34 = vor.u32 %v738_v30, %v605_v29  ;;  %v601_v35 = vld [vmem:[#allocation4 + $0xa0] sm:$0xf]  ;;  %v737_v36 = vld [vmem:[#allocation4 + $0xa4] sm:$0xf0] }
  0x16   :  { %v538_v37 = vor.u32 %v722_v33, %v537_v32  ;;  %v529_v38 = vld [vmem:[#allocation4] sm:$0xf]  ;;  %v720_v39 = vld [vmem:[#allocation4 + $0x4] sm:$0xf0]  ;;  %v602_v40 = vor.u32 %v737_v36, %v601_v35  ;;  %v889_v42 = vld [vmem:[#allocation2] sm:$0xf] }
  0x17   :  { %256 = vmatpush.bf16.msra.mxu2 %v618_v16  ;;  %v530_v41 = vor.u32 %v720_v39, %v529_v38  ;;  %v597_v43 = vld [vmem:[#allocation4 + $0x90] sm:$0xf]  ;;  %v736_v44 = vld [vmem:[#allocation4 + $0x94] sm:$0xf0]  ;;  %v593_v46 = vld [vmem:[#allocation4 + $0x80] sm:$0xf] }
  0x18   :  { %164 = vmatpush.bf16.msra.mxu0 %v570_v12  ;;  %v598_v45 = vor.u32 %v736_v44, %v597_v43  ;;  %v735_v47 = vld [vmem:[#allocation4 + $0x84] sm:$0xf0]  ;;  %v653_v49 = vld [vmem:[#allocation4 + $0x170] sm:$0xf]  ;;  %v750_v50 = vld [vmem:[#allocation4 + $0x174] sm:$0xf0] }
  0x19   :  { %v594_v48 = vor.u32 %v735_v47, %v593_v46  ;;  %v649_v51 = vld [vmem:[#allocation4 + $0x160] sm:$0xf]  ;;  %v654_v52 = vor.u32 %v750_v50, %v653_v49  ;;  %v749_v53 = vld [vmem:[#allocation4 + $0x164] sm:$0xf0]  ;;  %v645_v55 = vld [vmem:[#allocation4 + $0x150] sm:$0xf] }
  0x1a   :  { %v650_v54 = vor.u32 %v749_v53, %v649_v51  ;;  %v748_v56 = vld [vmem:[#allocation4 + $0x154] sm:$0xf0]  ;;  %v641_v58 = vld [vmem:[#allocation4 + $0x140] sm:$0xf]  ;;  %v747_v59 = vld [vmem:[#allocation4 + $0x144] sm:$0xf0] }
  0x1b   :  { %257 = vmatpush.bf16.msra.mxu2 %v614_v22  ;;  %335 = vmatpush.bf16.msra.mxu3 %v654_v52  ;;  %v646_v57 = vor.u32 %v748_v56, %v645_v55  ;;  %v642_v60 = vor.u32 %v747_v59, %v641_v58  ;;  %v637_v61 = vld [vmem:[#allocation4 + $0x130] sm:$0xf]  ;;  %v746_v62 = vld [vmem:[#allocation4 + $0x134] sm:$0xf0]  ;;  %v633_v0 = vld [vmem:[#allocation4 + $0x120] sm:$0xf] }
  0x1c   :  { %165 = vmatpush.bf16.msra.mxu0 %v562_v19  ;;  %v638_v63 = vor.u32 %v746_v62, %v637_v61  ;;  %v745_v1 = vld [vmem:[#allocation4 + $0x124] sm:$0xf0]  ;;  %v629_v10 = vld [vmem:[#allocation4 + $0x110] sm:$0xf]  ;;  %v744_v11 = vld [vmem:[#allocation4 + $0x114] sm:$0xf0] }
  0x1d   :  { %v892_v2 = vld [vmem:[#allocation6] ss:$8 sm:$0x3]  ;;  %v634_v3 = vor.u32 %v745_v1, %v633_v0  ;;  %v630_v12 = vor.u32 %v744_v11, %v629_v10  ;;  %v733_v16 = vld [vmem:[#allocation4 + $0x74] sm:$0xf] }
  0x1e   :  { %v78_v4 = vperm.slane %v892_v2, 0  ;;  %v625_v13 = vld [vmem:[#allocation4 + $0x100] sm:$0xf]  ;;  %v743_v14 = vld [vmem:[#allocation4 + $0x104] sm:$0xf0] }
  0x1f   :  { %258 = vmatpush.bf16.msra.mxu2 %v610_v28  ;;  %336 = vmatpush.bf16.msra.mxu3 %v650_v54  ;;  %v626_v15 = vor.u32 %v743_v14, %v625_v13  ;;  %v587_v17 = vld [vmem:[#allocation4 + $0x78] sm:$0xf0]  ;;  %v731_v18 = vld [vmem:[#allocation4 + $0x64] sm:$0xf]  ;;  %v579_v20 = vld [vmem:[#allocation4 + $0x68] sm:$0xf0] }
  0x20   :  { %166 = vmatpush.bf16.msra.mxu0 %v554_v25  ;;  %v590_v19 = vor.u32 %v733_v16, %v587_v17  ;;  %v685_v21 = vld [vmem:[#allocation4 + $0x1f0] sm:$0xf]  ;;  %v758_v22 = vld [vmem:[#allocation4 + $0x1f4] sm:$0xf0]  ;;  %v582_v23 = vor.u32 %v731_v18, %v579_v20  ;;  %v681_v25 = vld [vmem:[#allocation4 + $0x1e0] sm:$0xf] }
  0x21   :  { %v686_v24 = vor.u32 %v758_v22, %v685_v21  ;;  %v757_v26 = vld [vmem:[#allocation4 + $0x1e4] sm:$0xf0]  ;;  %v729_v27 = vld [vmem:[#allocation4 + $0x54] sm:$0xf]  ;;  %v571_v28 = vld [vmem:[#allocation4 + $0x58] sm:$0xf0] }
  0x22   :  { %175 = vmatpush.bf16.msra.mxu1 %v590_v19  ;;  %v682_v29 = vor.u32 %v757_v26, %v681_v25  ;;  %v677_v30 = vld [vmem:[#allocation4 + $0x1d0] sm:$0xf]  ;;  %v574_v32 = vor.u32 %v729_v27, %v571_v28  ;;  %v727_v33 = vld [vmem:[#allocation4 + $0x44] sm:$0xf]  ;;  %v673_v36 = vld [vmem:[#allocation4 + $0x1c0] sm:$0xf] }
  0x23   :  { %259 = vmatpush.bf16.msra.mxu2 %v606_v34  ;;  %337 = vmatpush.bf16.msra.mxu3 %v646_v57  ;;  %v563_v34 = vld [vmem:[#allocation4 + $0x48] sm:$0xf0]  ;;  %v725_v39 = vld [vmem:[#allocation4 + $0x34] sm:$0xf]  ;;  %v669_v43 = vld [vmem:[#allocation4 + $0x1b0] sm:$0xf] }
  0x24   :  { %167 = vmatpush.bf16.msra.mxu0 %v546_v31  ;;  %v756_v31 = vld [vmem:[#allocation4 + $0x1d4] sm:$0xf0]  ;;  %v566_v38 = vor.u32 %v727_v33, %v563_v34  ;;  %v723_v46 = vld [vmem:[#allocation4 + $0x24] sm:$0xf]  ;;  %v547_v47 = vld [vmem:[#allocation4 + $0x28] sm:$0xf0] }
  0x25   :  { %v678_v35 = vor.u32 %v756_v31, %v677_v30  ;;  %v754_v44 = vld [vmem:[#allocation4 + $0x1b4] sm:$0xf0]  ;;  %v550_v49 = vor.u32 %v723_v46, %v547_v47  ;;  %v721_v50 = vld [vmem:[#allocation4 + $0x14] sm:$0xf]  ;;  %v539_v51 = vld [vmem:[#allocation4 + $0x18] sm:$0xf0] }
  0x26   :  { %176 = vmatpush.bf16.msra.mxu1 %v582_v23  ;;  %v206_v52 = vld [vmem:[#allocation6 + $0x1] ss:$0 sm:$0xff]  ;;  %v542_v53 = vor.u32 %v721_v50, %v539_v51  ;;  %v719_v55 = vld [vmem:[#allocation4 + $0x4] sm:$0xf]  ;;  %v531_v56 = vld [vmem:[#allocation4 + $0x8] sm:$0xf0] }
  0x27   :  { %260 = vmatpush.bf16.msra.mxu2 %v602_v40  ;;  %338 = vmatpush.bf16.msra.mxu3 %v642_v60  ;;  %v555_v40 = vld [vmem:[#allocation4 + $0x38] sm:$0xf0]  ;;  %v534_v59 = vor.u32 %v719_v55, %v531_v56  ;;  %v665_v62 = vld [vmem:[#allocation4 + $0x1a0] sm:$0xf]  ;;  %v661_v1 = vld [vmem:[#allocation4 + $0x190] sm:$0xf] }
  0x28   :  { %168 = vmatpush.bf16.msra.mxu0 %v538_v37  ;;  %v755_v37 = vld [vmem:[#allocation4 + $0x1c4] sm:$0xf0]  ;;  %v713_v10 = vld [vmem:[#allocation4 + $0xe4] sm:$0xf]  ;;  %v764_v14 = vld [vmem:[#allocation4 + $0xd8] sm:$0xf0] }
  0x29   :  { %v705_v16 = vld [vmem:[#allocation4 + $0xc4] sm:$0xf]  ;;  %v763_v17 = vld [vmem:[#allocation4 + $0xc8] sm:$0xf0]  ;;  %v701_v19 = vld [vmem:[#allocation4 + $0xb4] sm:$0xf] }
  0x2a   :  { %177 = vmatpush.bf16.msra.mxu1 %v574_v32  ;;  %v706_v18 = vor.u32 %v763_v17, %v705_v16  ;;  %v762_v20 = vld [vmem:[#allocation4 + $0xb8] sm:$0xf0]  ;;  %v697_v22 = vld [vmem:[#allocation4 + $0xa4] sm:$0xf]  ;;  %v761_v23 = vld [vmem:[#allocation4 + $0xa8] sm:$0xf0] }
  0x2b   :  { %261 = vmatpush.bf16.msra.mxu2 %v598_v45  ;;  %339 = vmatpush.bf16.msra.mxu3 %v638_v63  ;;  %v558_v45 = vor.u32 %v725_v39, %v555_v40  ;;  %v753_v63 = vld [vmem:[#allocation4 + $0x1a4] sm:$0xf0]  ;;  %v702_v21 = vor.u32 %v762_v20, %v701_v19  ;;  %v286_v25 = vld [vmem:[#allocation6 + $0x2] ss:$0 sm:$0xff]  ;;  %v698_v26 = vor.u32 %v761_v23, %v697_v22  ;;  %v693_v33 = vld [vmem:[#allocation4 + $0x94] sm:$0xf] }
  0x2c   :  { %169 = vmatpush.bf16.msra.mxu0 %v530_v41  ;;  %v674_v41 = vor.u32 %v755_v37, %v673_v36  ;;  %v666_v0 = vor.u32 %v753_v63, %v665_v62  ;;  %v760_v34 = vld [vmem:[#allocation4 + $0x98] sm:$0xf0]  ;;  %v689_v36 = vld [vmem:[#allocation4 + $0x84] sm:$0xf]  ;;  %v759_v37 = vld [vmem:[#allocation4 + $0x88] sm:$0xf0] }
  0x2d   :  { %v79_v39 = vperm.slane %v892_v2, 1  ;;  %v447_v47 = vld [vmem:[#allocation6 + $0x3] ss:$0 sm:$0xff]  ;;  %v510_v50 = vld [vmem:[#allocation6 + $0x4] ss:$0 sm:$0xff] }
  0x2e   :  { %178 = vmatpush.bf16.msra.mxu1 %v566_v38  ;;  %v690_v38 = vor.u32 %v759_v37, %v689_v36 }
  0x2f   :  { %170 = vmatmul.bf16.vlgmr.msra.gmra.mxu0 %v889_v42  ;;  %262 = vmatpush.bf16.msra.mxu2 %v594_v48  ;;  %v670_v48 = vor.u32 %v754_v44, %v669_v43 }
  0x30   :  { %340 = vmatpush.bf16.msra.mxu3 %v634_v3  ;;  %415 = vmatpush.bf16.msrb.mxu0 %v686_v24  ;;  %v752_v3 = vld [vmem:[#allocation4 + $0x194] sm:$0xf0] }
  0x32   :  { %179 = vmatpush.bf16.msra.mxu1 %v558_v45 }
  0x34   :  { %341 = vmatpush.bf16.msra.mxu3 %v630_v12  ;;  %416 = vmatpush.bf16.msrb.mxu0 %v682_v29  ;;  %v765_v12 = vld [vmem:[#allocation4 + $0xe8] sm:$0xf0] }
  0x35   :  { %v714_v13 = vor.u32 %v765_v12, %v713_v10 }
  0x36   :  { %180 = vmatpush.bf16.msra.mxu1 %v550_v49 }
  0x38   :  { %342 = vmatpush.bf16.msra.mxu3 %v626_v15  ;;  %417 = vmatpush.bf16.msrb.mxu0 %v678_v35  ;;  %v694_v35 = vor.u32 %v760_v34, %v693_v33 }
  0x3a   :  { %181 = vmatpush.bf16.msra.mxu1 %v542_v53 }
  0x3c   :  { %418 = vmatpush.bf16.msrb.mxu0 %v674_v41 }
  0x3e   :  { %182 = vmatpush.bf16.msra.mxu1 %v534_v59 }
  0x40   :  { %419 = vmatpush.bf16.msrb.mxu0 %v670_v48 }
  0x41   :  { %183 = vmatmul.bf16.vlgmr.msra.gmra.mxu1 %v889_v42  ;;  %v709_v42 = vld [vmem:[#allocation4 + $0xd4] sm:$0xf] }
  0x42   :  { %v710_v15 = vor.u32 %v764_v14, %v709_v42 }
  0x44   :  { %420 = vmatpush.bf16.msrb.mxu0 %v666_v0 }
  0xac   :  { %v171_v5 = vpop.f32.mrf.mxu0 }
  0xad   :  { %v172_v6 = vadd.f32 %v171_v5, %v78_v4  ;;  %v662_v4 = vor.u32 %v752_v3, %v661_v1  ;;  %v657_v5 = vld [vmem:[#allocation4 + $0x180] sm:$0xf] }
  0xaf   :  { %v188_v7 = vmax.f32 %v172_v6, 0.0  ;;  %421 = vmatpush.bf16.msrb.mxu0 %v662_v4  ;;  %v751_v6 = vld [vmem:[#allocation4 + $0x184] sm:$0xf0] }
  0xb1   :  { %v205_v8 = vpack.c.bf16 %v188_v7, %v188_v7  ;;  %v658_v7 = vor.u32 %v751_v6, %v657_v5 }
  0xb3   :  { %263 = vmatmul.bf16.vlgmr.msra.gmra.mxu2 %v205_v8  ;;  %422 = vmatpush.bf16.msrb.mxu0 %v658_v7  ;;  %v717_v8 = vld [vmem:[#allocation4 + $0xf4] sm:$0xf] }
  0xb4   :  { %v173_v9 = vpop.f32.mrf.mxu0 }
  0xb5   :  { %v766_v9 = vld [vmem:[#allocation4 + $0xf8] sm:$0xf0] }
  0xb6   :  { %v718_v11 = vor.u32 %v766_v9, %v717_v8 }
  0xb8   :  { %496 = vmatpush.bf16.msrb.mxu1 %v718_v11 }
  0xbc   :  { %497 = vmatpush.bf16.msrb.mxu1 %v714_v13 }
  0xbe   :  { %v184_v24 = vpop.f32.mrf.mxu1 }
  0xbf   :  { %v185_v40 = vadd.f32 %v184_v24, %v79_v39 }
  0xc0   :  { %498 = vmatpush.bf16.msrb.mxu1 %v710_v15 }
  0xc4   :  { %499 = vmatpush.bf16.msrb.mxu1 %v706_v18 }
  0xc6   :  { %v186_v29 = vpop.f32.mrf.mxu1 }
  0xc8   :  { %500 = vmatpush.bf16.msrb.mxu1 %v702_v21 }
  0xcc   :  { %501 = vmatpush.bf16.msrb.mxu1 %v698_v26 }
  0xd0   :  { %502 = vmatpush.bf16.msrb.mxu1 %v694_v35 }
  0xd4   :  { %503 = vmatpush.bf16.msrb.mxu1 %v690_v38 }
 0x136   :  { %v264_v54 = vpop.f32.mrf.mxu2 }
 0x137   :  { %v265_v57 = vadd.f32 %v264_v54, %v206_v52  ;;  %v514_v54 = vld [vmem:[#allocation6 + $0x5] ss:$0 sm:$0xff] }
 0x139   :  { %v268_v58 = vmax.f32 %v265_v57, 0.0 }
 0x13b   :  { %v285_v60 = vpack.c.bf16 %v268_v58, %v268_v58 }
 0x13d   :  { %343 = vmatmul.bf16.vlgmr.msra.gmra.mxu3 %v285_v60 }
 0x13e   :  { %v266_v61 = vpop.f32.mrf.mxu2 }
 0x1c0   :  { %v344_v27 = vpop.f32.mrf.mxu3 }
 0x1c1   :  { %v345_v28 = vadd.f32 %v344_v27, %v286_v25 }
 0x1c3   :  { %772 = vtanh.f32 %v345_v28 }
 0x1c8   :  { %v346_v30 = vpop.f32.mrf.mxu3 }
 0x1c9   :  { %v773_v31 = vpop.eup %772 }
 0x1ca   :  { %349 = vst [vmem:[%s906_s3] sm:$0xff] %v773_v31  ;;  %v366_v32 = vpack.c.bf16 %v773_v31, %v773_v31 }
 0x1cc   :  { %423 = vmatmul.bf16.vlgmr.msrb.gmra.mxu0 %v366_v32 }
 0x249   :  { %v424_v41 = vpop.f32.mrf.mxu0 }
 0x24a   :  { %v428_v43 = vadd.f32 %v424_v41, %v185_v40 }
 0x24c   :  { %v429_v44 = vmax.f32 %v428_v43, 0.0 }
 0x24e   :  { %v446_v45 = vpack.c.bf16 %v429_v44, %v429_v44 }
 0x250   :  { %504 = vmatmul.bf16.vlgmr.msrb.gmra.mxu1 %v446_v45 }
 0x251   :  { %v426_v46 = vpop.f32.mrf.mxu0 }
 0x2cd   :  { %v505_v48 = vpop.f32.mrf.mxu1 }
 0x2ce   :  { %v506_v49 = vadd.f32 %v505_v48, %v447_v47 }
 0x2d0   :  { %v509_v51 = vmax.f32 %v506_v49, 0.0 }
 0x2d2   :  { %v511_v52 = vmul.f32 %v510_v50, %v509_v51 }
 0x2d4   :  { %512 = vadd.xlane.f32.xlu0 %v511_v52 }
 0x2d5   :  { %v507_v53 = vpop.f32.mrf.mxu1 }
 0x347   :  { %v513_v55 = vpop.xlane.xlu0 %512 }
 0x348   :  { %v515_v56 = vadd.f32 %v514_v54, %v513_v55 }
 0x34a   :  { %516 = vst [vmem:[%s907_s4] sm:$0xff] %v515_v56 }
 0x34b   :  { %525 = vsyncpa [#allocation3], 1 }
 0x34c   :  { %526 = vsyncpa [#allocation5], 1 }

</bundles_post_ra>
